<compile_context>
chip_gen: v7x
topology: tpu7x:2x2x1
jax: 0.10.0
libtpu: 0.0.40
codegen_flags: <defaults>
</compile_context>

<pallas_src>
import functools

import jax
import jax.numpy as jnp
from jax.experimental import pallas as pl
from jax.experimental.pallas import tpu as pltpu


def _round_up(x, m):
    return ((x + m - 1) // m) * m


def _vmem_budget_bytes():
    """Generation-aware VMEM budget for resident data (leaves headroom)."""
    cap = None
    try:
        info = pltpu.get_tpu_info()
        cap = int(getattr(info, "vmem_capacity_bytes", 0)) or None
    except Exception:
        cap = None
    if cap is None:
        try:
            kind = jax.devices()[0].device_kind.lower()
        except Exception:
            kind = ""
        if "7" in kind:
            cap = 64 * 1024 * 1024          # v7x: 64 MiB per TensorCore
        elif ("v2" in kind) or ("v3" in kind):
            cap = 16 * 1024 * 1024
        else:
            cap = 128 * 1024 * 1024         # v4/v5e/v6e
    # ~100 MiB cap on 128 MiB parts, ~56 MiB on 64 MiB parts.
    return min(cap - (8 << 20), 100 << 20)


# --------------------------------------------------------------------------
# Kernels
# --------------------------------------------------------------------------
def _disc_kernel_whole(x_ref, w0_ref, b0_ref, w1_ref, b1_ref, o_ref):
    # hidden0: Linear + ReLU (MXU matmul with f32 accumulation, bias/ReLU on VPU)
    h = jnp.dot(x_ref[...], w0_ref[...], preferred_element_type=jnp.float32)
    h = jnp.maximum(h + b0_ref[...], 0.0)
    # hidden1: Linear (no activation)
    out = jnp.dot(h.astype(w1_ref.dtype), w1_ref[...],
                  preferred_element_type=jnp.float32)
    o_ref[...] = (out + b1_ref[...]).astype(o_ref.dtype)


def _disc_kernel_ktiled(x_ref, w0_ref, b0_ref, w1_ref, b1_ref, o_ref, acc_ref,
                        *, d_in, tk):
    # Grid = (batch tiles, K tiles over D_in); K axis is "arbitrary" and the
    # output block is revisited across it (accumulator pattern).
    k = pl.program_id(1)
    nk = pl.num_programs(1)

    @pl.when(k == 0)
    def _():
        acc_ref[...] = jnp.zeros_like(acc_ref)

    x_blk = x_ref[...]
    w0_blk = w0_ref[...]
    if d_in % tk != 0:
        # Mask the contraction tail: the last K block's OOB lanes/rows hold
        # undefined data. Mask both operands so 0*garbage can never be NaN.
        col = k * tk + jax.lax.broadcasted_iota(jnp.int32, x_blk.shape, 1)
        x_blk = jnp.where(col < d_in, x_blk, 0).astype(x_blk.dtype)
        row = k * tk + jax.lax.broadcasted_iota(jnp.int32, w0_blk.shape, 0)
        w0_blk = jnp.where(row < d_in, w0_blk, 0).astype(w0_blk.dtype)

    acc_ref[...] += jnp.dot(x_blk, w0_blk, preferred_element_type=jnp.float32)

    @pl.when(k == nk - 1)
    def _():
        h = jnp.maximum(acc_ref[...] + b0_ref[...], 0.0)
        # TODO(synk): for very large hidden widths, additionally chunk H and
        # accumulate `out += h_chunk @ w1_chunk` to bound the (tile_b, H)
        # working set instead of materializing it whole.
        out = jnp.dot(h.astype(w1_ref.dtype), w1_ref[...],
                      preferred_element_type=jnp.float32)
        o_ref[...] = (out + b1_ref[...]).astype(o_ref.dtype)


# --------------------------------------------------------------------------
# Wrapper
# --------------------------------------------------------------------------
def discriminator_forward(x, w0, b0, w1, b1, *, max_tile_b=512,
                          force_k_tiling=False, k_tile=None):
    """ReLU(x @ w0 + b0) @ w1 + b1 via Pallas.

    x: [B, D_in], w0: [D_in, H], b0: [H], w1: [H, C], b1: [C] -> [B, C].
    """
    B, D_in = x.shape
    H = w0.shape[1]
    C = w1.shape[1]
    out_dtype = x.dtype
    isz = jnp.dtype(x.dtype).itemsize
    wsz = jnp.dtype(w0.dtype).itemsize

    b0_2d = b0.reshape(1, H)
    b1_2d = b1.reshape(1, C)

    budget = _vmem_budget_bytes()

    # Per-batch-row VMEM bytes in the whole-weight path: double-buffered x and
    # out tiles plus the f32 hidden intermediate.
    per_row = 2 * D_in * isz + 2 * C * isz + H * 4

    def pick_tile_b(resident_bytes, row_bytes):
        if B < 8:
            return B                       # single full-extent batch block
        avail = budget - resident_bytes - (2 << 20)
        t = avail // max(row_bytes, 1)
        t = min(int(t), max_tile_b, (B // 8) * 8)
        return max(8, (t // 8) * 8)

    # Whole-resident weight footprint (single-buffered via pl.Buffered(1)).
    whole_resident = (D_in * H + H * C) * wsz + (H + C) * wsz
    use_k_tiling = force_k_tiling or (
        whole_resident + 8 * per_row + (2 << 20) > budget)

    if not use_k_tiling:
        tile_b = pick_tile_b(whole_resident, per_row)
        grid = (pl.cdiv(B, tile_b),)
        est = whole_resident + tile_b * per_row + (2 << 20)
        vmem_limit = int(min(budget, max(est, 32 << 20)))
        # TODO(synk): on v7x, verify the batch axis is actually split across
        # both TensorCores (else switch to pltpu.CORE_PARALLEL / pl.core_map).
        return pl.pallas_call(
            _disc_kernel_whole,
            out_shape=jax.ShapeDtypeStruct((B, C), out_dtype),
            grid_spec=pltpu.PrefetchScalarGridSpec(
                num_scalar_prefetch=0,
                grid=grid,
                in_specs=[
                    pl.BlockSpec((tile_b, D_in), lambda i: (i, 0)),
                    pl.BlockSpec((D_in, H), lambda i: (0, 0),
                                 pipeline_mode=pl.Buffered(1)),
                    pl.BlockSpec((1, H), lambda i: (0, 0),
                                 pipeline_mode=pl.Buffered(1)),
                    pl.BlockSpec((H, C), lambda i: (0, 0),
                                 pipeline_mode=pl.Buffered(1)),
                    pl.BlockSpec((1, C), lambda i: (0, 0),
                                 pipeline_mode=pl.Buffered(1)),
                ],
                out_specs=pl.BlockSpec((tile_b, C), lambda i: (i, 0)),
            ),
            compiler_params=pltpu.CompilerParams(
                dimension_semantics=("parallel",),
                vmem_limit_bytes=vmem_limit,
            ),
        )(x, w0, b0_2d, w1, b1_2d)

    # ---------------- K-tiled path (weights too large to sit whole) --------
    if k_tile is None:
        k_tile = 512
    k_tile = max(128, (min(k_tile, _round_up(D_in, 128)) // 128) * 128)
    nk = pl.cdiv(D_in, k_tile)

    # Residency: double-buffered w0 K-slab, whole w1/biases, f32 accumulator.
    tiled_resident = 2 * k_tile * H * wsz + H * C * wsz + (H + C) * wsz
    per_row_k = 2 * k_tile * isz + 2 * C * isz + 2 * H * 4
    tile_b = pick_tile_b(tiled_resident, per_row_k)
    grid = (pl.cdiv(B, tile_b), nk)
    est = tiled_resident + tile_b * per_row_k + (2 << 20)
    vmem_limit = int(min(budget, max(est, 32 << 20)))

    kernel = functools.partial(_disc_kernel_ktiled, d_in=D_in, tk=k_tile)
    return pl.pallas_call(
        kernel,
        out_shape=jax.ShapeDtypeStruct((B, C), out_dtype),
        grid_spec=pltpu.PrefetchScalarGridSpec(
            num_scalar_prefetch=0,
            grid=grid,
            in_specs=[
                pl.BlockSpec((tile_b, k_tile), lambda i, k: (i, k)),
                pl.BlockSpec((k_tile, H), lambda i, k: (k, 0)),
                pl.BlockSpec((1, H), lambda i, k: (0, 0),
                             pipeline_mode=pl.Buffered(1)),
                pl.BlockSpec((H, C), lambda i, k: (0, 0),
                             pipeline_mode=pl.Buffered(1)),
                pl.BlockSpec((1, C), lambda i, k: (0, 0),
                             pipeline_mode=pl.Buffered(1)),
            ],
            out_specs=pl.BlockSpec((tile_b, C), lambda i, k: (i, 0)),
            scratch_shapes=[pltpu.VMEM((tile_b, H), jnp.float32)],
        ),
        compiler_params=pltpu.CompilerParams(
            dimension_semantics=("parallel", "arbitrary"),
            vmem_limit_bytes=vmem_limit,
        ),
    )(x, w0, b0_2d, w1, b1_2d)


# --------------------------------------------------------------------------
# Parameter init matching the module's __init__ (weights stored [in, out])
# --------------------------------------------------------------------------
def init_discriminator_params(key, dims, num_species):
    k0w, k0b, k1w, k1b = jax.random.split(key, 4)
    d_in, d_hid = dims[0], dims[1]

    # hidden0 weight: kaiming_normal_(nonlinearity='relu'), fan_in = d_in
    w0 = jax.random.normal(k0w, (d_in, d_hid), jnp.float32) * jnp.sqrt(2.0 / d_in)
    bound0 = 1.0 / jnp.sqrt(d_in)
    b0 = jax.random.uniform(k0b, (d_hid,), jnp.float32, -bound0, bound0)

    # hidden1: PyTorch default init, fan_in = d_hid
    bound1 = 1.0 / jnp.sqrt(d_hid)
    w1 = jax.random.uniform(k1w, (d_hid, num_species), jnp.float32, -bound1, bound1)
    b1 = jax.random.uniform(k1b, (num_species,), jnp.float32, -bound1, bound1)
    return w0, b0, w1, b1


if __name__ == "__main__":
    key = jax.random.PRNGKey(0)
    kx, kp, kx2, kx3 = jax.random.split(key, 4)

    # --- primary check: small shapes consistent with the module ------------
    B = 8
    dims = [32, 16]
    num_species = 4
    x = jax.random.normal(kx, (B, dims[0]), jnp.float32)
    w0, b0, w1, b1 = init_discriminator_params(kp, dims, num_species)

    out = jax.block_until_ready(discriminator_forward(x, w0, b0, w1, b1))
    ref = jnp.maximum(x @ w0 + b0, 0.0) @ w1 + b1
    assert out.shape == (B, num_species)
    assert jnp.allclose(out, ref, atol=1e-5, rtol=1e-5)

    # --- ragged batch: partial last batch tile, no host-side jnp.pad -------
    x2 = jax.random.normal(kx2, (37, dims[0]), jnp.float32)
    out2 = jax.block_until_ready(discriminator_forward(x2, w0, b0, w1, b1))
    ref2 = jnp.maximum(x2 @ w0 + b0, 0.0) @ w1 + b1
    assert out2.shape == (37, num_species)
    assert jnp.allclose(out2, ref2, atol=1e-5, rtol=1e-5)

    # --- K-tiled reduction path, forced at small shapes for validation -----
    dims3 = [160, 24]
    w0b, b0b, w1b, b1b = init_discriminator_params(kp, dims3, 3)
    x3 = jax.random.normal(kx3, (16, dims3[0]), jnp.float32)
    out3 = jax.block_until_ready(
        discriminator_forward(x3, w0b, b0b, w1b, b1b,
                              force_k_tiling=True, k_tile=128))
    ref3 = jnp.maximum(x3 @ w0b + b0b, 0.0) @ w1b + b1b
    assert out3.shape == (16, 3)
    assert jnp.allclose(out3, ref3, atol=1e-4, rtol=1e-4)

    print("KERNEL_OK")
</pallas_src>

<mosaic_0001>
module attributes {stable_mosaic.version = 11 : i64} {
  func.func @_disc_kernel_whole(%arg0: i32, %arg1: memref<8x32xf32, #tpu.memory_space<vmem>>, %arg2: memref<32x16xf32, #tpu.memory_space<vmem>>, %arg3: memref<1x16xf32, #tpu.memory_space<vmem>>, %arg4: memref<16x4xf32, #tpu.memory_space<vmem>>, %arg5: memref<1x4xf32, #tpu.memory_space<vmem>>, %arg6: memref<8x4xf32, #tpu.memory_space<vmem>>) attributes {dimension_semantics = [#tpu.dimension_semantics<parallel>], iteration_bounds = array<i64: 1>, scalar_prefetch = 0 : i64, scratch_operands = 0 : i64, tpu.core_type = #tpu.core_type<tc>, window_params = [{transform_indices = @transform_0, window_bounds = array<i64: 8, 32>}, {pipeline_mode = #tpu.pipeline_mode<synchronous>, transform_indices = @transform_1, window_bounds = array<i64: 32, 16>}, {pipeline_mode = #tpu.pipeline_mode<synchronous>, transform_indices = @transform_2, window_bounds = array<i64: 1, 16>}, {pipeline_mode = #tpu.pipeline_mode<synchronous>, transform_indices = @transform_3, window_bounds = array<i64: 16, 4>}, {pipeline_mode = #tpu.pipeline_mode<synchronous>, transform_indices = @transform_4, window_bounds = array<i64: 1, 4>}, {transform_indices = @transform_5, window_bounds = array<i64: 8, 4>}]} {
    %c0 = arith.constant 0 : index
    %c0_0 = arith.constant 0 : index
    %0 = vector.load %arg1[%c0, %c0_0] : memref<8x32xf32, #tpu.memory_space<vmem>>, vector<8x32xf32>
    %c0_1 = arith.constant 0 : index
    %c0_2 = arith.constant 0 : index
    %1 = vector.load %arg2[%c0_1, %c0_2] : memref<32x16xf32, #tpu.memory_space<vmem>>, vector<32x16xf32>
    %cst = arith.constant dense<0.000000e+00> : vector<8x16xf32>
    %2 = tpu.matmul %0, %1, %cst {dimension_numbers = #tpu.dot_dimension_numbers<[1], [0], [0], [1], [0, 0, 1, 1], [], []>} : vector<8x32xf32>, vector<32x16xf32>, vector<8x16xf32> -> vector<8x16xf32>
    %c0_3 = arith.constant 0 : index
    %c0_4 = arith.constant 0 : index
    %3 = vector.load %arg3[%c0_3, %c0_4] : memref<1x16xf32, #tpu.memory_space<vmem>>, vector<1x16xf32>
    %4 = vector.broadcast %3 : vector<1x16xf32> to vector<8x16xf32>
    %5 = arith.addf %2, %4 : vector<8x16xf32>
    %cst_5 = arith.constant 0.000000e+00 : f32
    %6 = vector.broadcast %cst_5 : f32 to vector<8x16xf32>
    %7 = arith.maximumf %5, %6 : vector<8x16xf32>
    %c0_6 = arith.constant 0 : index
    %c0_7 = arith.constant 0 : index
    %8 = vector.load %arg4[%c0_6, %c0_7] : memref<16x4xf32, #tpu.memory_space<vmem>>, vector<16x4xf32>
    %cst_8 = arith.constant dense<0.000000e+00> : vector<8x4xf32>
    %9 = tpu.matmul %7, %8, %cst_8 {dimension_numbers = #tpu.dot_dimension_numbers<[1], [0], [0], [1], [0, 0, 1, 1], [], []>} : vector<8x16xf32>, vector<16x4xf32>, vector<8x4xf32> -> vector<8x4xf32>
    %c0_9 = arith.constant 0 : index
    %c0_10 = arith.constant 0 : index
    %10 = vector.load %arg5[%c0_9, %c0_10] : memref<1x4xf32, #tpu.memory_space<vmem>>, vector<1x4xf32>
    %11 = vector.broadcast %10 : vector<1x4xf32> to vector<8x4xf32>
    %12 = arith.addf %9, %11 : vector<8x4xf32>
    %c0_11 = arith.constant 0 : index
    %c0_12 = arith.constant 0 : index
    %13 = vector.load %arg6[%c0_11, %c0_12] : memref<8x4xf32, #tpu.memory_space<vmem>>, vector<8x4xf32>
    tpu.vector_store %arg6[%c0_11, %c0_12], %12 {strides = array<i32>} : memref<8x4xf32, #tpu.memory_space<vmem>>, vector<8x4xf32>,
    return
  }
  func.func @transform_0(%arg0: i32) -> (i32, i32) {
    %c0_i32 = arith.constant 0 : i32
    %c0_i32_0 = arith.constant 0 : i32
    return %arg0, %c0_i32 : i32, i32
  }
  func.func @transform_1(%arg0: i32) -> (i32, i32) {
    %c0_i32 = arith.constant 0 : i32
    %c0_i32_0 = arith.constant 0 : i32
    %c0_i32_1 = arith.constant 0 : i32
    return %c0_i32, %c0_i32_0 : i32, i32
  }
  func.func @transform_2(%arg0: i32) -> (i32, i32) {
    %c0_i32 = arith.constant 0 : i32
    %c0_i32_0 = arith.constant 0 : i32
    %c0_i32_1 = arith.constant 0 : i32
    return %c0_i32, %c0_i32_0 : i32, i32
  }
  func.func @transform_3(%arg0: i32) -> (i32, i32) {
    %c0_i32 = arith.constant 0 : i32
    %c0_i32_0 = arith.constant 0 : i32
    %c0_i32_1 = arith.constant 0 : i32
    return %c0_i32, %c0_i32_0 : i32, i32
  }
  func.func @transform_4(%arg0: i32) -> (i32, i32) {
    %c0_i32 = arith.constant 0 : i32
    %c0_i32_0 = arith.constant 0 : i32
    %c0_i32_1 = arith.constant 0 : i32
    return %c0_i32, %c0_i32_0 : i32, i32
  }
  func.func @transform_5(%arg0: i32) -> (i32, i32) {
    %c0_i32 = arith.constant 0 : i32
    %c0_i32_0 = arith.constant 0 : i32
    return %arg0, %c0_i32 : i32, i32
  }
}

</mosaic_0001>

<bundles_post_ra>
// kernel: tpu_custom_call.1
= control target key start
LH: loop header
LB: loop body
LE: loop exit
PB: predicated region body
PF: predicated region fallthrough
CT: control target
= control target key end

     0   :  { %v238_v0 = vmov 0.0|0.0   ;;  %vm239_vm0 = vmmov 0   ;;  %v240_v4 = vmov 0.0   ;;  %vm32_vm1 = vcmask 261120   ;;  %s301_s1 = inlined_call_operand.vmem [shape: f32[32,16], index: 1, kind: input, shape index: {}]   ;;  %s302_s0 = inlined_call_operand.vmem [shape: f32[8,32], index: 0, kind: input, shape index: {}]   ;;  %s303_s3 = inlined_call_operand.vmem [shape: f32[16,4], index: 3, kind: input, shape index: {}]   ;;  %s304_s2 = inlined_call_operand.vmem [shape: f32[1,16], index: 2, kind: input, shape index: {}]   ;;  %s305_s4 = inlined_call_operand.vmem [shape: f32[1,4], index: 4, kind: input, shape index: {}]   ;;  %s306_s5 = inlined_call_operand.vmem [shape: f32[8,4], index: 5, kind: output, shape index: {}]  }
   0x1   :  { %226 = vmatprep.subr.bf16.mxu0 %v238_v0  ;;  %v21_v1 = vld [vmem:[%s301_s1] sm:$0xff]  ;;  %v22_v2 = vld [vmem:[%s301_s1 + $0x8] sm:$0xff]  ;;  %v23_v3 = vld [vmem:[%s301_s1 + $0x10] sm:$0xff]  ;;  %216 = vmatprep.mubr.msk.f32.mxu0 %vm239_vm0, %v240_v4  ;;  %vm116_vm2 = vcmask 130048   ;;  %vm190_vm3 = vcmask 31744  }
   0x2   :  { %v227_v5 = vpack.c.bf16 %v22_v2, %v21_v1  ;;  %v24_v6 = vld [vmem:[%s301_s1 + $0x18] sm:$0xff]  ;;  %232 = vmatprep.subr.bf16.mxu1 %v238_v0  ;;  %223 = vmatprep.mubr.msk.f32.mxu1 %vm239_vm0, %v240_v4  ;;  %v20_v8 = vld [vmem:[%s302_s0] sm:$0xff]  ;;  %v108_v10 = vld [vmem:[%s303_s3 + $0x8] sm:$0xff] }
   0x3   :  { %v230_v7 = vpack.c.bf16 %v24_v6, %v23_v3  ;;  %v107_v9 = vld [vmem:[%s303_s3] sm:$0xff] }
   0x4   :  { %228 = vmatpush3.bf16.msra.mxu0 %v227_v5  ;;  %v233_v11 = vpack.c.bf16 %v108_v10, %v107_v9  ;;  %v196_v12 = vld [vmem:[%s304_s2] ss:$0 sm:$0xff] }
   0x5   :  { %229 = vmatprep.subr.bf16.mxu0 %v238_v0  ;;  %v198_v17 = vld [vmem:[%s305_s4] ss:$0 sm:$0xff] }
   0x6   :  { %234 = vmatpush3.bf16.msra.mxu1 %v233_v11 }
   0x8   :  { %231 = vmatpush3.bf16.msra.mxu0 %v230_v7 }
   0xb   :  { %217 = vmatmul.mubr.msk.f32.vlgmr.msra.gmra.mrb[0].mxu0 %vm32_vm1, %v20_v8 }
  0xde   :  { %v102_v13 = vpop.f32.mrb[0].mxu0 }
  0xdf   :  { %v103_v14 = vadd.f32 %v196_v12, %v102_v13  ;;  %v218_v15 = vpop.f32.mrb[1].mxu0 }
  0xe1   :  { %v106_v16 = vmax.f32 %v103_v14, 0.0 }
  0xe3   :  { %224 = vmatmul.mubr.msk.f32.vlgmr.msra.gmra.mrb[0].mxu1 %vm116_vm2, %v106_v16 }
 0x1b6   :  { %v186_v18 = vpop.f32.mrb[0].mxu1 }
 0x1b7   :  { %v187_v19 = vadd.f32 %v198_v17, %v186_v18  ;;  %v225_v20 = vpop.f32.mrb[1].mxu1 }
 0x1b9   :  { %191 = vst.msk [vmem:[%s306_s5] sm:$0xff] %vm190_vm3, %v187_v19 }

</bundles_post_ra>
